<compile_context>
chip_gen: v7x
topology: tpu7x:2x2x1
jax: 0.10.0
libtpu: 0.0.40
codegen_flags: <defaults>
</compile_context>

<pallas_src>
import jax
import jax.numpy as jnp
from jax.experimental import pallas as pl
from jax.experimental.pallas import tpu as pltpu

N_HIDDEN = 512


def encoder_kernel(x_ref, w1_ref, b1_ref, w2_ref, b2_ref, z_ref):
    # Layer 1: h = relu(x @ W1^T + b1). Cast x to the MXU dtype in-VMEM (free
    # VPU work) so the matmul runs at full bf16 MXU rate; accumulate in f32.
    x = x_ref[...].astype(w1_ref.dtype)
    h = jnp.dot(x, w1_ref[...], preferred_element_type=jnp.float32)
    h = jnp.maximum(h + b1_ref[...], 0.0)
    # Layer 2: z = h @ W2^T + b2. h stays in VMEM (fused, no HBM round trip).
    z = jnp.dot(h.astype(w2_ref.dtype), w2_ref[...],
                preferred_element_type=jnp.float32)
    z_ref[...] = (z + b2_ref[...]).astype(z_ref.dtype)


def _round_up(a, b):
    return ((a + b - 1) // b) * b


def _cdiv(a, b):
    return -(-a // b)


def _choose_tile_m(B, align, cap=1024):
    """Batch tile: as big as possible (per-step overhead ~0.35us, small tiles
    sit below the HBM roofline), but balanced so large B always yields >= 2
    roughly-equal grid steps (v7x megacore)."""
    tm = min(cap, _round_up(B, align))
    if B > tm:
        n_steps = _cdiv(B, tm)
        tm = min(tm, _round_up(_cdiv(B, n_steps), align))
    return tm


def prepare_encoder_params(W_1, b_1, W_2, b_2, *, use_bf16=True):
    """One-time parameter preprocessing (constants across forward calls):
    transpose weights for plain x @ W layout, cast to the MXU dtype, and
    reshape biases to (1, out) broadcast rows kept in f32 for the epilogue."""
    mxu_dtype = jnp.bfloat16 if use_bf16 else jnp.asarray(W_1).dtype
    w1t = jnp.asarray(W_1).T.astype(mxu_dtype)          # (n_input, n_hidden)
    w2t = jnp.asarray(W_2).T.astype(mxu_dtype)          # (n_hidden, n_latent)
    b1r = jnp.asarray(b_1).reshape(1, -1).astype(jnp.float32)
    b2r = jnp.asarray(b_2).reshape(1, -1).astype(jnp.float32)
    return w1t, b1r, w2t, b2r


def encoder_forward(x, params, *, out_dtype=None):
    """x: (B, n_input); params from prepare_encoder_params.
    Returns (B, n_latent) in out_dtype (defaults to x.dtype)."""
    w1t, b1r, w2t, b2r = params
    B, n_input = x.shape
    n_in_w, n_hidden = w1t.shape
    n_hid_w, n_latent = w2t.shape
    assert n_in_w == n_input and n_hid_w == n_hidden
    out_dtype = x.dtype if out_dtype is None else out_dtype

    # 16-row alignment: bf16 packs 16 sublanes per vreg; harmless for f32.
    align = 16 if w1t.dtype == jnp.bfloat16 else 8
    tm = _choose_tile_m(B, align)
    B_pad = _round_up(B, tm)

    x_p = jnp.pad(x, ((0, B_pad - B), (0, 0))) if B_pad != B else x

    grid = (B_pad // tm,)
    z = pl.pallas_call(
        encoder_kernel,
        out_shape=jax.ShapeDtypeStruct((B_pad, n_latent), out_dtype),
        grid_spec=pltpu.PrefetchScalarGridSpec(
            num_scalar_prefetch=0,
            grid=grid,
            in_specs=[
                pl.BlockSpec((tm, n_input), lambda i: (i, 0)),          # x tile
                pl.BlockSpec((n_input, n_hidden), lambda i: (0, 0)),    # W1^T (resident)
                pl.BlockSpec((1, n_hidden), lambda i: (0, 0)),          # b1
                pl.BlockSpec((n_hidden, n_latent), lambda i: (0, 0)),   # W2^T (resident)
                pl.BlockSpec((1, n_latent), lambda i: (0, 0)),          # b2
            ],
            # Natural-width output (last dim == full array dim is legal even
            # when < 128); accepting masked stores beats 4x padded writeback
            # plus a wrapper slice copy in this memory-bound regime.
            out_specs=pl.BlockSpec((tm, n_latent), lambda i: (i, 0)),
        ),
        compiler_params=pltpu.CompilerParams(
            dimension_semantics=("parallel",),
        ),
    )(x_p, w1t, b1r, w2t, b2r)

    # Padded batch rows compute relu(b1)@W2^T + b2 (garbage) -- drop them.
    return z if B_pad == B else z[:B]


def encoder_reference(x, W_1, b_1, W_2, b_2):
    h = jnp.maximum(x @ W_1.T + b_1, 0.0)
    return h @ W_2.T + b_2


if __name__ == "__main__":
    # Small, deterministic problem: batch=16, n_input=64, n_latent=32.
    B, n_input, n_latent = 16, 64, 32
    key = jax.random.PRNGKey(0)
    kx, k1, kb1, k2, kb2, kx2 = jax.random.split(key, 6)

    x = jax.random.normal(kx, (B, n_input), dtype=jnp.float32)
    # Matches nn.Parameter(...).normal_(mean=0.0, std=0.1) shapes/init style.
    W_1 = 0.1 * jax.random.normal(k1, (N_HIDDEN, n_input), dtype=jnp.float32)
    b_1 = 0.1 * jax.random.normal(kb1, (N_HIDDEN,), dtype=jnp.float32)
    W_2 = 0.1 * jax.random.normal(k2, (n_latent, N_HIDDEN), dtype=jnp.float32)
    b_2 = 0.1 * jax.random.normal(kb2, (n_latent,), dtype=jnp.float32)

    z_ref = encoder_reference(x, W_1, b_1, W_2, b_2)

    # f32 MXU path (exact vs reference).
    params_f32 = prepare_encoder_params(W_1, b_1, W_2, b_2, use_bf16=False)
    z_f32 = encoder_forward(x, params_f32)
    jax.block_until_ready(z_f32)
    assert z_f32.shape == (B, n_latent)
    assert jnp.allclose(z_f32, z_ref, atol=1e-4, rtol=1e-4)

    # bf16 MXU operands, f32 accumulation + epilogue (looser tolerance);
    # params prepared once, reused across forward calls.
    params_bf16 = prepare_encoder_params(W_1, b_1, W_2, b_2, use_bf16=True)
    z_bf16 = encoder_forward(x, params_bf16)
    jax.block_until_ready(z_bf16)
    assert z_bf16.shape == (B, n_latent)
    assert jnp.allclose(z_bf16, z_ref, atol=5e-2, rtol=5e-2)

    # bf16 output dtype knob (halves output writeback in the mem-bound regime).
    z_bf16_out = encoder_forward(x, params_bf16, out_dtype=jnp.bfloat16)
    jax.block_until_ready(z_bf16_out)
    assert z_bf16_out.dtype == jnp.bfloat16
    assert jnp.allclose(z_bf16_out.astype(jnp.float32), z_ref, atol=1e-1, rtol=1e-1)

    # Odd batch (exercises batch padding + row slicing).
    B2 = 19
    x2 = jax.random.normal(kx2, (B2, n_input), dtype=jnp.float32)
    z2 = encoder_forward(x2, params_bf16)
    jax.block_until_ready(z2)
    assert z2.shape == (B2, n_latent)
    assert jnp.allclose(z2, encoder_reference(x2, W_1, b_1, W_2, b_2),
                        atol=5e-2, rtol=5e-2)

    print("KERNEL_OK")
</pallas_src>

<mosaic_0001>
module attributes {stable_mosaic.version = 11 : i64} {
  func.func @encoder_kernel(%arg0: i32, %arg1: memref<16x64xf32, #tpu.memory_space<vmem>>, %arg2: memref<64x512xf32, #tpu.memory_space<vmem>>, %arg3: memref<1x512xf32, #tpu.memory_space<vmem>>, %arg4: memref<512x32xf32, #tpu.memory_space<vmem>>, %arg5: memref<1x32xf32, #tpu.memory_space<vmem>>, %arg6: memref<16x32xf32, #tpu.memory_space<vmem>>) attributes {dimension_semantics = [#tpu.dimension_semantics<parallel>], iteration_bounds = array<i64: 1>, scalar_prefetch = 0 : i64, scratch_operands = 0 : i64, tpu.core_type = #tpu.core_type<tc>, window_params = [{transform_indices = @transform_0, window_bounds = array<i64: 16, 64>}, {pipeline_mode = #tpu.pipeline_mode<synchronous>, transform_indices = @transform_1, window_bounds = array<i64: 64, 512>}, {pipeline_mode = #tpu.pipeline_mode<synchronous>, transform_indices = @transform_2, window_bounds = array<i64: 1, 512>}, {pipeline_mode = #tpu.pipeline_mode<synchronous>, transform_indices = @transform_3, window_bounds = array<i64: 512, 32>}, {pipeline_mode = #tpu.pipeline_mode<synchronous>, transform_indices = @transform_4, window_bounds = array<i64: 1, 32>}, {transform_indices = @transform_5, window_bounds = array<i64: 16, 32>}]} {
    %c0 = arith.constant 0 : index
    %c0_0 = arith.constant 0 : index
    %0 = vector.load %arg1[%c0, %c0_0] : memref<16x64xf32, #tpu.memory_space<vmem>>, vector<16x64xf32>
    %c0_1 = arith.constant 0 : index
    %c0_2 = arith.constant 0 : index
    %1 = vector.load %arg2[%c0_1, %c0_2] : memref<64x512xf32, #tpu.memory_space<vmem>>, vector<64x512xf32>
    %cst = arith.constant dense<0.000000e+00> : vector<16x512xf32>
    %2 = tpu.matmul %0, %1, %cst {dimension_numbers = #tpu.dot_dimension_numbers<[1], [0], [0], [1], [0, 0, 1, 1], [], []>} : vector<16x64xf32>, vector<64x512xf32>, vector<16x512xf32> -> vector<16x512xf32>
    %c0_3 = arith.constant 0 : index
    %c0_4 = arith.constant 0 : index
    %3 = vector.load %arg3[%c0_3, %c0_4] : memref<1x512xf32, #tpu.memory_space<vmem>>, vector<1x512xf32>
    %4 = vector.broadcast %3 : vector<1x512xf32> to vector<16x512xf32>
    %5 = arith.addf %2, %4 : vector<16x512xf32>
    %cst_5 = arith.constant 0.000000e+00 : f32
    %6 = vector.broadcast %cst_5 : f32 to vector<16x512xf32>
    %7 = arith.maximumf %5, %6 : vector<16x512xf32>
    %c0_6 = arith.constant 0 : index
    %c0_7 = arith.constant 0 : index
    %8 = vector.load %arg4[%c0_6, %c0_7] : memref<512x32xf32, #tpu.memory_space<vmem>>, vector<512x32xf32>
    %cst_8 = arith.constant dense<0.000000e+00> : vector<16x32xf32>
    %9 = tpu.matmul %7, %8, %cst_8 {dimension_numbers = #tpu.dot_dimension_numbers<[1], [0], [0], [1], [0, 0, 1, 1], [], []>} : vector<16x512xf32>, vector<512x32xf32>, vector<16x32xf32> -> vector<16x32xf32>
    %c0_9 = arith.constant 0 : index
    %c0_10 = arith.constant 0 : index
    %10 = vector.load %arg5[%c0_9, %c0_10] : memref<1x32xf32, #tpu.memory_space<vmem>>, vector<1x32xf32>
    %11 = vector.broadcast %10 : vector<1x32xf32> to vector<16x32xf32>
    %12 = arith.addf %9, %11 : vector<16x32xf32>
    %c0_11 = arith.constant 0 : index
    %c0_12 = arith.constant 0 : index
    %13 = vector.load %arg6[%c0_11, %c0_12] : memref<16x32xf32, #tpu.memory_space<vmem>>, vector<16x32xf32>
    tpu.vector_store %arg6[%c0_11, %c0_12], %12 {strides = array<i32>} : memref<16x32xf32, #tpu.memory_space<vmem>>, vector<16x32xf32>,
    return
  }
  func.func @transform_0(%arg0: i32) -> (i32, i32) {
    %c0_i32 = arith.constant 0 : i32
    %c0_i32_0 = arith.constant 0 : i32
    return %arg0, %c0_i32 : i32, i32
  }
  func.func @transform_1(%arg0: i32) -> (i32, i32) {
    %c0_i32 = arith.constant 0 : i32
    %c0_i32_0 = arith.constant 0 : i32
    %c0_i32_1 = arith.constant 0 : i32
    return %c0_i32, %c0_i32_0 : i32, i32
  }
  func.func @transform_2(%arg0: i32) -> (i32, i32) {
    %c0_i32 = arith.constant 0 : i32
    %c0_i32_0 = arith.constant 0 : i32
    %c0_i32_1 = arith.constant 0 : i32
    return %c0_i32, %c0_i32_0 : i32, i32
  }
  func.func @transform_3(%arg0: i32) -> (i32, i32) {
    %c0_i32 = arith.constant 0 : i32
    %c0_i32_0 = arith.constant 0 : i32
    %c0_i32_1 = arith.constant 0 : i32
    return %c0_i32, %c0_i32_0 : i32, i32
  }
  func.func @transform_4(%arg0: i32) -> (i32, i32) {
    %c0_i32 = arith.constant 0 : i32
    %c0_i32_0 = arith.constant 0 : i32
    %c0_i32_1 = arith.constant 0 : i32
    return %c0_i32, %c0_i32_0 : i32, i32
  }
  func.func @transform_5(%arg0: i32) -> (i32, i32) {
    %c0_i32 = arith.constant 0 : i32
    %c0_i32_0 = arith.constant 0 : i32
    return %arg0, %c0_i32 : i32, i32
  }
}

</mosaic_0001>

<bundles_post_ra>
// kernel: tpu_custom_call.1
= control target key start
LH: loop header
LB: loop body
LE: loop exit
PB: predicated region body
PF: predicated region fallthrough
CT: control target
= control target key end

     0   :  { %v691_v7 = vmov 0.0   ;;  %vm77_vm0 = vcmask 523264   ;;  %s1045_s0 = inlined_call_operand.vmem [shape: f32[16,64], index: 0, kind: input, shape index: {}]   ;;  %s1046_s1 = inlined_call_operand.vmem [shape: f32[64,512], index: 1, kind: input, shape index: {}]   ;;  %s1047_s2 = inlined_call_operand.vmem [shape: f32[1,512], index: 2, kind: input, shape index: {}]   ;;  %s1048_s3 = inlined_call_operand.vmem [shape: f32[512,32], index: 3, kind: input, shape index: {}]   ;;  %s1049_s4 = inlined_call_operand.vmem [shape: f32[1,32], index: 4, kind: input, shape index: {}]   ;;  %s1050_s5 = inlined_call_operand.hbm [shape: f32[16,32], index: 5, kind: output, shape index: {}]  }
   0x1   :  { %v24_v0 = vld [vmem:[%s1046_s1 + $0x8] sm:$0xff]  ;;  %v26_v2 = vld [vmem:[%s1046_s1 + $0x18] sm:$0xff]  ;;  %v23_v5 = vld [vmem:[%s1046_s1] sm:$0xff]  ;;  %148 = vmatprep.mubr.f32.mxu0 %v691_v7  ;;  %225 = vmatprep.mubr.f32.mxu1 %v691_v7 }
   0x2   :  { %v28_v1 = vld [vmem:[%s1046_s1 + $0x28] sm:$0xff]  ;;  %v30_v4 = vld [vmem:[%s1046_s1 + $0x38] sm:$0xff]  ;;  %v27_v6 = vld [vmem:[%s1046_s1 + $0x20] sm:$0xff] }
   0x3   :  { %v567_v3 = vpack.c.bf16 %v28_v1, %v24_v0  ;;  %v583_v8 = vpack.c.bf16 %v30_v4, %v26_v2  ;;  %v569_v9 = vpack.c.bf16 %v27_v6, %v23_v5  ;;  %v25_v10 = vld [vmem:[%s1046_s1 + $0x10] sm:$0xff]  ;;  %v32_v12 = vld [vmem:[%s1046_s1 + $0x48] sm:$0xff]  ;;  %v34_v15 = vld [vmem:[%s1046_s1 + $0x58] sm:$0xff] }
   0x4   :  { %v29_v11 = vld [vmem:[%s1046_s1 + $0x30] sm:$0xff]  ;;  %v36_v14 = vld [vmem:[%s1046_s1 + $0x68] sm:$0xff]  ;;  %v38_v16 = vld [vmem:[%s1046_s1 + $0x78] sm:$0xff] }
   0x5   :  { %568 = vmatprep.subr.bf16.mxu0 %v567_v3  ;;  %v585_v13 = vpack.c.bf16 %v29_v11, %v25_v10  ;;  %584 = vmatprep.subr.bf16.mxu1 %v583_v8  ;;  %v571_v17 = vpack.c.bf16 %v36_v14, %v32_v12  ;;  %v587_v18 = vpack.c.bf16 %v38_v16, %v34_v15  ;;  %v31_v19 = vld [vmem:[%s1046_s1 + $0x40] sm:$0xff]  ;;  %v33_v21 = vld [vmem:[%s1046_s1 + $0x50] sm:$0xff]  ;;  %v40_v24 = vld [vmem:[%s1046_s1 + $0x88] sm:$0xff] }
   0x6   :  { %570 = vmatpush1.bf16.msra.mxu0 %v569_v9  ;;  %v35_v20 = vld [vmem:[%s1046_s1 + $0x60] sm:$0xff]  ;;  %v37_v23 = vld [vmem:[%s1046_s1 + $0x70] sm:$0xff]  ;;  %v44_v25 = vld [vmem:[%s1046_s1 + $0xa8] sm:$0xff] }
   0x7   :  { %586 = vmatpush1.bf16.msra.mxu1 %v585_v13  ;;  %v573_v22 = vpack.c.bf16 %v35_v20, %v31_v19  ;;  %572 = vmatprep.subr.bf16.mxu0 %v571_v17  ;;  %v589_v26 = vpack.c.bf16 %v37_v23, %v33_v21  ;;  %v575_v27 = vpack.c.bf16 %v44_v25, %v40_v24  ;;  %v42_v28 = vld [vmem:[%s1046_s1 + $0x98] sm:$0xff]  ;;  %v39_v30 = vld [vmem:[%s1046_s1 + $0x80] sm:$0xff]  ;;  %v41_v33 = vld [vmem:[%s1046_s1 + $0x90] sm:$0xff] }
   0x8   :  { %588 = vmatprep.subr.bf16.mxu1 %v587_v18  ;;  %v46_v29 = vld [vmem:[%s1046_s1 + $0xb8] sm:$0xff]  ;;  %v43_v32 = vld [vmem:[%s1046_s1 + $0xa0] sm:$0xff]  ;;  %v45_v34 = vld [vmem:[%s1046_s1 + $0xb0] sm:$0xff] }
   0x9   :  { %v591_v31 = vpack.c.bf16 %v46_v29, %v42_v28  ;;  %v577_v35 = vpack.c.bf16 %v43_v32, %v39_v30  ;;  %v48_v36 = vld [vmem:[%s1046_s1 + $0xc8] sm:$0xff]  ;;  %v50_v38 = vld [vmem:[%s1046_s1 + $0xd8] sm:$0xff]  ;;  %v593_v39 = vpack.c.bf16 %v45_v34, %v41_v33  ;;  %v47_v42 = vld [vmem:[%s1046_s1 + $0xc0] sm:$0xff] }
   0xa   :  { %574 = vmatpush1.bf16.msra.mxu0 %v573_v22  ;;  %v52_v37 = vld [vmem:[%s1046_s1 + $0xe8] sm:$0xff]  ;;  %v54_v41 = vld [vmem:[%s1046_s1 + $0xf8] sm:$0xff]  ;;  %v51_v43 = vld [vmem:[%s1046_s1 + $0xe0] sm:$0xff] }
   0xb   :  { %590 = vmatpush1.bf16.msra.mxu1 %v589_v26  ;;  %576 = vmatprep.subr.bf16.mxu0 %v575_v27  ;;  %v579_v40 = vpack.c.bf16 %v52_v37, %v48_v36  ;;  %v595_v44 = vpack.c.bf16 %v54_v41, %v50_v38  ;;  %v49_v45 = vld [vmem:[%s1046_s1 + $0xd0] sm:$0xff]  ;;  %v262_v47 = vld [vmem:[%s1048_s3 + $0x80] sm:$0xff]  ;;  %v263_v48 = vld [vmem:[%s1048_s3 + $0x88] sm:$0xff]  ;;  %v581_v49 = vpack.c.bf16 %v51_v43, %v47_v42 }
   0xc   :  { %592 = vmatprep.subr.bf16.mxu1 %v591_v31  ;;  %v53_v46 = vld [vmem:[%s1046_s1 + $0xf0] sm:$0xff]  ;;  %v294_v50 = vld [vmem:[%s1048_s3 + $0x180] sm:$0xff]  ;;  %v295_v51 = vld [vmem:[%s1048_s3 + $0x188] sm:$0xff]  ;;  %v599_v53 = vpack.c.bf16 %v263_v48, %v262_v47 }
   0xd   :  { %v597_v52 = vpack.c.bf16 %v53_v46, %v49_v45  ;;  %v631_v54 = vpack.c.bf16 %v295_v51, %v294_v50  ;;  %v246_v55 = vld [vmem:[%s1048_s3] sm:$0xff]  ;;  %v247_v56 = vld [vmem:[%s1048_s3 + $0x8] sm:$0xff]  ;;  %v264_v59 = vld [vmem:[%s1048_s3 + $0x90] sm:$0xff] }
   0xe   :  { %578 = vmatpush1.bf16.msra.mxu0 %v577_v35  ;;  %v278_v57 = vld [vmem:[%s1048_s3 + $0x100] sm:$0xff]  ;;  %v279_v58 = vld [vmem:[%s1048_s3 + $0x108] sm:$0xff]  ;;  %v265_v60 = vld [vmem:[%s1048_s3 + $0x98] sm:$0xff]  ;;  %v601_v0 = vpack.c.bf16 %v247_v56, %v246_v55 }
   0xf   :  { %594 = vmatpush1.bf16.msra.mxu1 %v593_v39  ;;  %580 = vmatprep.subr.bf16.mxu0 %v579_v40  ;;  %v21_v61 = vld [vmem:[%s1045_s0] sm:$0xff]  ;;  %v296_v62 = vld [vmem:[%s1048_s3 + $0x190] sm:$0xff]  ;;  %v297_v63 = vld [vmem:[%s1048_s3 + $0x198] sm:$0xff]  ;;  %v633_v1 = vpack.c.bf16 %v279_v58, %v278_v57  ;;  %v603_v2 = vpack.c.bf16 %v265_v60, %v264_v59 }
  0x10   :  { %596 = vmatprep.subr.bf16.mxu1 %v595_v44  ;;  %v248_v3 = vld [vmem:[%s1048_s3 + $0x10] sm:$0xff]  ;;  %v249_v4 = vld [vmem:[%s1048_s3 + $0x18] sm:$0xff]  ;;  %v635_v6 = vpack.c.bf16 %v297_v63, %v296_v62  ;;  %v266_v9 = vld [vmem:[%s1048_s3 + $0xa0] sm:$0xff] }
  0x11   :  { %v280_v5 = vld [vmem:[%s1048_s3 + $0x110] sm:$0xff]  ;;  %v281_v8 = vld [vmem:[%s1048_s3 + $0x118] sm:$0xff]  ;;  %v267_v10 = vld [vmem:[%s1048_s3 + $0xa8] sm:$0xff]  ;;  %v605_v14 = vpack.c.bf16 %v249_v4, %v248_v3 }
  0x12   :  { %582 = vmatpush1.bf16.msra.mxu0 %v581_v49  ;;  %v22_v11 = vld [vmem:[%s1045_s0 + $0x8] sm:$0xff]  ;;  %v298_v12 = vld [vmem:[%s1048_s3 + $0x1a0] sm:$0xff]  ;;  %v637_v15 = vpack.c.bf16 %v281_v8, %v280_v5  ;;  %v607_v16 = vpack.c.bf16 %v267_v10, %v266_v9  ;;  %v268_v21 = vld [vmem:[%s1048_s3 + $0xb0] sm:$0xff] }
  0x13   :  { %598 = vmatpush1.bf16.msra.mxu1 %v597_v52  ;;  %600 = vmatprep.subr.bf16.mxu0 %v599_v53  ;;  %v299_v13 = vld [vmem:[%s1048_s3 + $0x1a8] sm:$0xff]  ;;  %v250_v17 = vld [vmem:[%s1048_s3 + $0x20] sm:$0xff]  ;;  %v269_v22 = vld [vmem:[%s1048_s3 + $0xb8] sm:$0xff] }
  0x14   :  { %632 = vmatprep.subr.bf16.mxu1 %v631_v54  ;;  %v251_v18 = vld [vmem:[%s1048_s3 + $0x28] sm:$0xff]  ;;  %v282_v19 = vld [vmem:[%s1048_s3 + $0x120] sm:$0xff]  ;;  %v300_v23 = vld [vmem:[%s1048_s3 + $0x1b0] sm:$0xff]  ;;  %v611_v27 = vpack.c.bf16 %v269_v22, %v268_v21 }
  0x15   :  { %486 = vmatmul.mubr.msk.f32.vlgmr.msra.gmra.mrb[0].mxu0 %vm77_vm0, %v21_v61  ;;  %v283_v20 = vld [vmem:[%s1048_s3 + $0x128] sm:$0xff]  ;;  %v301_v24 = vld [vmem:[%s1048_s3 + $0x1b8] sm:$0xff]  ;;  %v609_v25 = vpack.c.bf16 %v251_v18, %v250_v17  ;;  %v252_v28 = vld [vmem:[%s1048_s3 + $0x30] sm:$0xff] }
  0x16   :  { %488 = vmatmul.mubr.msk.f32.vlgmr.msra.gmra.mrb[0].mxu1 %vm77_vm0, %v21_v61  ;;  %154 = vmatprep.mubr.f32.mxu0 %v691_v7  ;;  %v641_v26 = vpack.c.bf16 %v283_v20, %v282_v19  ;;  %v253_v29 = vld [vmem:[%s1048_s3 + $0x38] sm:$0xff]  ;;  %v284_v30 = vld [vmem:[%s1048_s3 + $0x130] sm:$0xff]  ;;  %v643_v31 = vpack.c.bf16 %v301_v24, %v300_v23  ;;  %v270_v33 = vld [vmem:[%s1048_s3 + $0xc0] sm:$0xff] }
  0x17   :  { %231 = vmatprep.mubr.f32.mxu1 %v691_v7  ;;  %602 = vmatpush3.bf16.msra.mxu0 %v601_v0  ;;  %v639_v7 = vpack.c.bf16 %v299_v13, %v298_v12  ;;  %v285_v32 = vld [vmem:[%s1048_s3 + $0x138] sm:$0xff]  ;;  %v271_v34 = vld [vmem:[%s1048_s3 + $0xc8] sm:$0xff]  ;;  %v302_v35 = vld [vmem:[%s1048_s3 + $0x1c0] sm:$0xff]  ;;  %v613_v37 = vpack.c.bf16 %v253_v29, %v252_v28 }
  0x18   :  { %634 = vmatpush3.bf16.msra.mxu1 %v633_v1  ;;  %604 = vmatprep.subr.bf16.mxu0 %v603_v2  ;;  %v303_v36 = vld [vmem:[%s1048_s3 + $0x1c8] sm:$0xff] }
  0x19   :  { %487 = vmatmul.mubr.msk.f32.gmra.mrb[2].mxu0 %vm77_vm0, %v22_v11  ;;  %636 = vmatprep.subr.bf16.mxu1 %v635_v6 }
  0x1a   :  { %489 = vmatmul.mubr.msk.f32.gmra.mrb[2].mxu1 %vm77_vm0, %v22_v11 }
  0x1b   :  { %606 = vmatpush3.bf16.msra.mxu0 %v605_v14 }
  0x1c   :  { %638 = vmatpush3.bf16.msra.mxu1 %v637_v15  ;;  %608 = vmatprep.subr.bf16.mxu0 %v607_v16 }
  0x1d   :  { %640 = vmatprep.subr.bf16.mxu1 %v639_v7 }
  0x1f   :  { %610 = vmatpush3.bf16.msra.mxu0 %v609_v25 }
  0x20   :  { %10 = vsyncpa [#allocation3], 0  ;;  %642 = vmatpush3.bf16.msra.mxu1 %v641_v26  ;;  %612 = vmatprep.subr.bf16.mxu0 %v611_v27  ;;  %v645_v38 = vpack.c.bf16 %v285_v32, %v284_v30  ;;  %v615_v39 = vpack.c.bf16 %v271_v34, %v270_v33  ;;  %v254_v40 = vld [vmem:[%s1048_s3 + $0x40] sm:$0xff]  ;;  %v255_v41 = vld [vmem:[%s1048_s3 + $0x48] sm:$0xff]  ;;  %v647_v43 = vpack.c.bf16 %v303_v36, %v302_v35  ;;  %v57_v7 = vlaneseq  ;;  %s692_s7 = smov [#allocation2]  }
  0x21   :  { %v286_v42 = vld [vmem:[%s1048_s3 + $0x140] sm:$0xff]  ;;  %644 = vmatprep.subr.bf16.mxu1 %v643_v31  ;;  %v287_v44 = vld [vmem:[%s1048_s3 + $0x148] sm:$0xff]  ;;  %v272_v45 = vld [vmem:[%s1048_s3 + $0xd0] sm:$0xff]  ;;  %v617_v49 = vpack.c.bf16 %v255_v41, %v254_v40  ;;  %vm467_vm1 = vcmask 261120   ;;  %s475_s8 = sshll.u32 %s692_s7, 4  ;;  %s476_s8 = int_to_ptr.vmem [resolvable:$true] %s475_s8 }
  0x22   :  { %v273_v46 = vld [vmem:[%s1048_s3 + $0xd8] sm:$0xff]  ;;  %v304_v47 = vld [vmem:[%s1048_s3 + $0x1d0] sm:$0xff]  ;;  %v649_v50 = vpack.c.bf16 %v287_v44, %v286_v42  ;;  %v274_v57 = vld [vmem:[%s1048_s3 + $0xe0] sm:$0xff]  ;;  %v58_v20 = vshrl.u32 %v57_v7, 7  ;;  %p672_p1 = scmp.lt.s32.totalorder %s476_s8, %s476_s8 }
  0x23   :  { %v305_v48 = vld [vmem:[%s1048_s3 + $0x1d8] sm:$0xff]  ;;  %614 = vmatpush3.bf16.msra.mxu0 %v613_v37  ;;  %v619_v51 = vpack.c.bf16 %v273_v46, %v272_v45  ;;  %v256_v52 = vld [vmem:[%s1048_s3 + $0x50] sm:$0xff]  ;;  %v275_v58 = vld [vmem:[%s1048_s3 + $0xe8] sm:$0xff] }
  0x24   :  { %646 = vmatpush3.bf16.msra.mxu1 %v645_v38  ;;  %616 = vmatprep.subr.bf16.mxu0 %v615_v39  ;;  %v257_v53 = vld [vmem:[%s1048_s3 + $0x58] sm:$0xff]  ;;  %v288_v54 = vld [vmem:[%s1048_s3 + $0x150] sm:$0xff]  ;;  %v651_v55 = vpack.c.bf16 %v305_v48, %v304_v47  ;;  %v306_v59 = vld [vmem:[%s1048_s3 + $0x1e0] sm:$0xff]  ;;  %v623_v63 = vpack.c.bf16 %v275_v58, %v274_v57  ;;  %v59_v21 = vsub.s32 0, %v58_v20  ;;  %v67_v23 = vsub.s32 2, %v58_v20 }
  0x25   :  { %648 = vmatprep.subr.bf16.mxu1 %v647_v43  ;;  %v289_v56 = vld [vmem:[%s1048_s3 + $0x158] sm:$0xff]  ;;  %v307_v60 = vld [vmem:[%s1048_s3 + $0x1e8] sm:$0xff]  ;;  %v621_v61 = vpack.c.bf16 %v257_v53, %v256_v52  ;;  %v258_v1 = vld [vmem:[%s1048_s3 + $0x60] sm:$0xff]  ;;  %v63_v24 = vsub.s32 1, %v58_v20  ;;  %v71_v25 = vsub.s32 3, %v58_v20 }
  0x26   :  { %v653_v62 = vpack.c.bf16 %v289_v56, %v288_v54  ;;  %v655_v0 = vpack.c.bf16 %v307_v60, %v306_v59  ;;  %v259_v2 = vld [vmem:[%s1048_s3 + $0x68] sm:$0xff]  ;;  %v290_v3 = vld [vmem:[%s1048_s3 + $0x160] sm:$0xff]  ;;  %v276_v8 = vld [vmem:[%s1048_s3 + $0xf0] sm:$0xff] }
  0x27   :  { %618 = vmatpush3.bf16.msra.mxu0 %v617_v49  ;;  %v625_v4 = vpack.c.bf16 %v259_v2, %v258_v1  ;;  %v291_v5 = vld [vmem:[%s1048_s3 + $0x168] sm:$0xff]  ;;  %v277_v9 = vld [vmem:[%s1048_s3 + $0xf8] sm:$0xff]  ;;  %v308_v10 = vld [vmem:[%s1048_s3 + $0x1f0] sm:$0xff] }
  0x28   :  { %650 = vmatpush3.bf16.msra.mxu1 %v649_v50  ;;  %620 = vmatprep.subr.bf16.mxu0 %v619_v51  ;;  %v657_v6 = vpack.c.bf16 %v291_v5, %v290_v3  ;;  %v627_v11 = vpack.c.bf16 %v277_v9, %v276_v8  ;;  %v309_v12 = vld [vmem:[%s1048_s3 + $0x1f8] sm:$0xff]  ;;  %v260_v13 = vld [vmem:[%s1048_s3 + $0x70] sm:$0xff]  ;;  %v55_v22 = vld [vmem:[%s1047_s2] sm:$0xf] }
  0x29   :  { %652 = vmatprep.subr.bf16.mxu1 %v651_v55  ;;  %v261_v14 = vld [vmem:[%s1048_s3 + $0x78] sm:$0xff]  ;;  %v659_v15 = vpack.c.bf16 %v309_v12, %v308_v10  ;;  %v292_v17 = vld [vmem:[%s1048_s3 + $0x170] sm:$0xff]  ;;  %v60_v26 = vrot.slane %v55_v22, %v59_v21  ;;  %v68_v27 = vrot.slane %v55_v22, %v67_v23  ;;  %v64_v28 = vrot.slane %v55_v22, %v63_v24  ;;  %v490_v56 = vld [vmem:[%s1049_s4] ss:$0 sm:$0xff]  ;;  %s667_s4 = scalar_lea.vmem %s476_s8, 256 }
  0x2a   :  { %v629_v16 = vpack.c.bf16 %v261_v14, %v260_v13  ;;  %v293_v18 = vld [vmem:[%s1048_s3 + $0x178] sm:$0xff]  ;;  %v72_v29 = vrot.slane %v55_v22, %v71_v25  ;;  %p668_p0 = scmp.ne.s32.totalorder %s476_s8, %s667_s4  ;;  %p673_p2 = scmp.lt.s32.totalorder %s667_s4, %s667_s4 }
  0x2b   :  { %622 = vmatpush3.bf16.msra.mxu0 %v621_v61  ;;  %v661_v19 = vpack.c.bf16 %v293_v18, %v292_v17 }
  0x2c   :  { %654 = vmatpush3.bf16.msra.mxu1 %v653_v62  ;;  %624 = vmatprep.subr.bf16.mxu0 %v623_v63  ;;  %p674_p3 = por %p673_p2, %p672_p1 }
  0x2d   :  { %656 = vmatprep.subr.bf16.mxu1 %v655_v0 }
  0x2e   :  { %p675_p4 = pnand %p674_p3, %p668_p0 }
  0x2f   :  { %626 = vmatpush3.bf16.msra.mxu0 %v625_v4 }
  0x30   :  { %658 = vmatpush3.bf16.msra.mxu1 %v657_v6  ;;  %628 = vmatprep.subr.bf16.mxu0 %v627_v11 }
  0x31   :  { %660 = vmatprep.subr.bf16.mxu1 %v659_v15 }
  0x33   :  { %630 = vmatpush3.bf16.msra.mxu0 %v629_v16 }
  0x34   :  { %662 = vmatpush3.bf16.msra.mxu1 %v661_v19 }
  0xe8   :  { %v150_v30 = vpop.f32.mrb[0].mxu0 }
  0xe9   :  { %v151_v31 = vadd.f32 %v150_v30, %v60_v26  ;;  %v227_v32 = vpop.f32.mrb[0].mxu1  ;;  %v152_v33 = vpop.f32.mrb[1].mxu0 }
  0xea   :  { %v228_v34 = vadd.f32 %v227_v32, %v68_v27  ;;  %v153_v35 = vadd.f32 %v152_v33, %v64_v28  ;;  %v229_v36 = vpop.f32.mrb[1].mxu1 }
  0xeb   :  { %v230_v37 = vadd.f32 %v229_v36, %v72_v29  ;;  %v238_v41 = vmax.f32 %v151_v31, 0.0 }
  0xec   :  { %v240_v38 = vmax.f32 %v228_v34, 0.0  ;;  %v239_v39 = vmax.f32 %v153_v35, 0.0  ;;  %v156_v40 = vpop.f32.mrb[2].mxu0 }
  0xed   :  { %v241_v42 = vmax.f32 %v230_v37, 0.0  ;;  %v157_v43 = vadd.f32 %v156_v40, %v60_v26  ;;  %v233_v44 = vpop.f32.mrb[2].mxu1  ;;  %v158_v45 = vpop.f32.mrb[3].mxu0 }
  0xee   :  { %v234_v46 = vadd.f32 %v233_v44, %v68_v27  ;;  %v159_v47 = vadd.f32 %v158_v45, %v64_v28  ;;  %v235_v48 = vpop.f32.mrb[3].mxu1  ;;  %381 = vmatprep.mubr.f32.mxu0 %v239_v39 }
  0xef   :  { %v236_v49 = vadd.f32 %v235_v48, %v72_v29  ;;  %456 = vmatprep.mubr.f32.mxu1 %v241_v42  ;;  %382 = vmatmul.mubr.f32.vlgmr.msra.gmra.mrb[4].mxu0 %v238_v41  ;;  %v242_v52 = vmax.f32 %v157_v43, 0.0 }
  0xf0   :  { %v244_v50 = vmax.f32 %v234_v46, 0.0  ;;  %v243_v51 = vmax.f32 %v159_v47, 0.0  ;;  %457 = vmatmul.mubr.f32.vlgmr.msra.gmra.mrb[4].mxu1 %v240_v38 }
  0xf1   :  { %v245_v53 = vmax.f32 %v236_v49, 0.0 }
  0xf2   :  { %386 = vmatprep.mubr.f32.mxu0 %v243_v51 }
  0xf3   :  { %461 = vmatprep.mubr.f32.mxu1 %v245_v53  ;;  %387 = vmatmul.mubr.f32.gmra.mrb[6].mxu0 %v242_v52 }
  0xf4   :  { %462 = vmatmul.mubr.f32.gmra.mrb[6].mxu1 %v244_v50 }
 0x1c2   :  { %v523_v54 = vpop.f32.mrb[4].mxu0 }
 0x1c3   :  { %v561_v55 = vpop.f32.mrb[4].mxu1  ;;  %v524_v57 = vpop.f32.mrb[5].mxu0 }
 0x1c4   :  { %v525_v58 = vadd.f32 %v524_v57, %v523_v54  ;;  %v562_v59 = vpop.f32.mrb[5].mxu1 }
 0x1c5   :  { %v563_v60 = vadd.f32 %v562_v59, %v561_v55 }
 0x1c6   :  { %v384_v61 = vadd.f32 %v525_v58, %v490_v56  ;;  %v526_v62 = vpop.f32.mrb[6].mxu0 }
 0x1c7   :  { %v564_v63 = vpop.f32.mrb[6].mxu1  ;;  %v527_v0 = vpop.f32.mrb[7].mxu0 }
 0x1c8   :  { %v459_v1 = vadd.f32 %v563_v60, %v384_v61  ;;  %v528_v2 = vadd.f32 %v527_v0, %v526_v62  ;;  %v565_v3 = vpop.f32.mrb[7].mxu1 }
 0x1c9   :  { %v566_v4 = vadd.f32 %v565_v3, %v564_v63 }
 0x1ca   :  { %468 = vst.msk [vmem:[#allocation2] sm:$0xff] %vm467_vm1, %v459_v1  ;;  %v389_v5 = vadd.f32 %v528_v2, %v490_v56 }
 0x1cc   :  { %v464_v6 = vadd.f32 %v566_v4, %v389_v5 }
 0x1ce   :  { %469 = vst.msk [vmem:[#allocation2 + $0x8] sm:$0xff] %vm467_vm1, %v464_v6 }
 0x1cf   :  { %678 = shalt.err (!%p675_p4)
}
 0x1d0   :  { %s679_s11 = scalar_lea.hbm %s1050_s5, 256 }
 0x1d1   :  { %p680_p5 = scmp.ne.s32.totalorder %s1050_s5, %s679_s11  ;;  %p683_p6 = scmp.lt.u32.totalorder %s679_s11, %s1050_s5 }
 0x1d3   :  { %p685_p7 = pnand %p683_p6, %p680_p5 }
 0x1d5   :  { %688 = shalt.err (!%p685_p7)
}
 0x1d6   :  { %s693_s15 = smov 128   ;;  %s694_s16 = smov 8  }
 0x1d7   :  { %481 = dma.vmem_to_hbm [thread:$0]  %s476_s8, 256, %s1050_s5, [#allocation3], %s693_s15, %s693_s15, %s694_s16  }
 0x1d8   :  { %689 = dma.done.wait [#allocation3], 256  }
 0x1d9   :  { %690 = vsyncadd [#allocation3], 4294967040 }
 0x1da   :  { %485 = vsyncpa [#allocation3], 1 }

</bundles_post_ra>
